<compile_context>
chip_gen: v5e
topology: v5e:2x2
jax: 0.10.0
libtpu: 0.0.40
codegen_flags: <defaults>
</compile_context>

<pallas_src>
import jax
import jax.numpy as jnp
from jax.experimental import pallas as pl
from jax.experimental.pallas import tpu as pltpu


def _round_up(d, m=128):
    return ((d + m - 1) // m) * m


# --------------------------- fused forward kernel -----------------------------
def _make_fused_kernel(n_layers):
    """Kernel over G packed graphs: all SAGE layers + max-pool + final Linear."""

    def kernel(*refs):
        adj_ref, mask_ref, x_ref = refs[0], refs[1], refs[2]
        layer_refs = refs[3:3 + 2 * n_layers]          # alternating (W^T, bias)
        wfc_ref = refs[3 + 2 * n_layers]
        bfc_ref = refs[4 + 2 * n_layers]
        o_ref = refs[5 + 2 * n_layers]

        g, n, _ = adj_ref.shape

        # ---- prologue (once per grid step, shared by every layer) ----
        a_bf16 = adj_ref[...]                                   # (G,N,N) 0/1 bf16
        # in-degree accumulated in f32 (exact for any degree); 1/(deg+1) once.
        deg = jnp.sum(a_bf16.astype(jnp.float32), axis=-1, keepdims=True)
        inv_deg1 = 1.0 / (deg + 1.0)                            # (G,N,1)
        mask = mask_ref[...]                                    # (G,N,1) f32

        h = x_ref[...].astype(jnp.float32)                      # (G,N,F0_pad)
        for l in range(n_layers):
            wt = layer_refs[2 * l][...]                         # (Fi_pad,Fo_pad) bf16
            bias = layer_refs[2 * l + 1][...].reshape(1, 1, -1)  # (1,1,Fo_pad) f32
            pfi, pfo = wt.shape
            if pfi > pfo:
                # project-then-aggregate: exact for the 'gcn' aggregator since the
                # per-row scale 1/(deg+1) commutes with the linear map W.
                hp = jnp.dot(h.reshape(g * n, pfi).astype(jnp.bfloat16), wt,
                             preferred_element_type=jnp.float32
                             ).reshape(g, n, pfo)
                neigh = jnp.einsum('gij,gjf->gif', a_bf16,
                                   hp.astype(jnp.bfloat16),
                                   preferred_element_type=jnp.float32)
                y = (neigh + hp) * inv_deg1 + bias
            else:
                # aggregate-then-project
                neigh = jnp.einsum('gij,gjf->gif', a_bf16,
                                   h.astype(jnp.bfloat16),
                                   preferred_element_type=jnp.float32)
                agg = (neigh + h) * inv_deg1
                y = jnp.dot(agg.reshape(g * n, pfi).astype(jnp.bfloat16), wt,
                            preferred_element_type=jnp.float32
                            ).reshape(g, n, pfo) + bias
            h = jnp.maximum(y, 0.0) * mask                      # relu + node mask

        # ---- readout: max over nodes + final Linear (G rows -> better MXU fill) ----
        pooled = jnp.max(h, axis=1)                             # (G, Hpad)
        o_ref[0] = (jnp.dot(pooled.astype(jnp.bfloat16), wfc_ref[...],
                            preferred_element_type=jnp.float32) + bfc_ref[...])

    return kernel


# ------------------------------ helpers ----------------------------------------
def _pick_group(batch, n):
    """Graphs packed per grid step: fill >=256 MXU rows, keep >=2 steps for v7x."""
    if n % 8 != 0:
        return 1          # packed path merges (G,N) sublanes; needs N % 8 == 0
    g = max(1, min(256 // max(n, 1), 8))
    g = min(g, batch)
    while g > 1 and -(-batch // g) < 2:   # keep both v7x TensorCores busy if B >= 2
        g //= 2
    return max(g, 1)


def _vmem_limit_bytes(g, n, pdims, out_pad, n_layers):
    """Scoped-VMEM budget: 2x(A, x) double buffers + weights + f32 intermediates."""
    adj = 2 * g * n * n * 2                        # bf16 A, double-buffered
    feat = 2 * g * n * pdims[0] * 2                # bf16 x, double-buffered
    msk = 2 * g * n * 128 * 4                      # mask (lane-padded)
    wts = sum(pdims[i] * pdims[i + 1] * 2 + pdims[i + 1] * 4
              for i in range(n_layers))            # single-buffered weights/biases
    wts += pdims[-1] * out_pad * 2 + out_pad * 4
    inter = 6 * g * n * max(pdims + [out_pad]) * 4  # live f32 h/neigh/agg copies
    outb = 2 * g * out_pad * 4
    total = adj + feat + msk + wts + inter + outb
    # headroom, clamped so the request is valid on every generation (v7x: 64 MiB)
    return int(min(64 << 20, max(24 << 20, 2 * total)))


# ------------------------------ full forward ----------------------------------
def graphsage_forward(x, adj, mask, sage_params, fc_params):
    """x: (B,N,Fin) f32, adj: (B,N,N) (nonzero=edge), mask: (B,N). -> (B,out_dim)."""
    B, N, f_in = x.shape
    n_layers = len(sage_params)

    # Padded (lane-dense) feature dims.  Zero padding is exact: padded input
    # columns are zero, padded weight rows/cols and biases are zero.
    dims = [f_in] + [w.shape[0] for (w, _) in sage_params]
    pdims = [_round_up(d) for d in dims]
    out_dim = fc_params[0].shape[0]
    out_pad = _round_up(out_dim)

    # graphs packed per grid step / number of grid steps
    g = _pick_group(B, N)
    steps = -(-B // g)
    b_pad = steps * g

    # adjacency: binarize once here, ship as bf16 (0/1 exact) -> halves A DMA vs f32
    adj_b = (adj != 0).astype(jnp.bfloat16)
    x_b = x.astype(jnp.bfloat16)                        # features only feed matmuls
    mask3 = mask.reshape(B, N, 1).astype(jnp.float32)

    if b_pad != B:                                      # pad batch with empty graphs
        pb = b_pad - B
        adj_b = jnp.pad(adj_b, ((0, pb), (0, 0), (0, 0)))
        x_b = jnp.pad(x_b, ((0, pb), (0, 0), (0, 0)))
        mask3 = jnp.pad(mask3, ((0, pb), (0, 0), (0, 0)))
    x_b = jnp.pad(x_b, ((0, 0), (0, 0), (0, pdims[0] - f_in)))

    # constant-index operands never need re-fetch: single-buffer them
    const_mode = pl.Buffered(1)

    layer_args, layer_specs = [], []
    for l, (w, b) in enumerate(sage_params):
        fi, fo = dims[l], dims[l + 1]
        pfi, pfo = pdims[l], pdims[l + 1]
        wt = jnp.zeros((pfi, pfo), jnp.bfloat16).at[:fi, :fo].set(
            w.T.astype(jnp.bfloat16))
        bb = jnp.zeros((1, pfo), jnp.float32).at[:, :fo].set(b.astype(jnp.float32))
        layer_args += [wt, bb]
        layer_specs += [
            pl.BlockSpec((pfi, pfo), lambda s: (0, 0), pipeline_mode=const_mode),
            pl.BlockSpec((1, pfo), lambda s: (0, 0), pipeline_mode=const_mode),
        ]

    w_fc, b_fc = fc_params
    h_last, ph_last = dims[-1], pdims[-1]
    wfc = jnp.zeros((ph_last, out_pad), jnp.bfloat16).at[:h_last, :out_dim].set(
        w_fc.T.astype(jnp.bfloat16))
    bfc = jnp.zeros((1, out_pad), jnp.float32).at[:, :out_dim].set(
        b_fc.astype(jnp.float32))

    out = pl.pallas_call(
        _make_fused_kernel(n_layers),
        out_shape=jax.ShapeDtypeStruct((steps, g, out_pad), jnp.float32),
        grid=(steps,),
        in_specs=[
            pl.BlockSpec((g, N, N), lambda s: (s, 0, 0)),          # adjacency (bf16)
            pl.BlockSpec((g, N, 1), lambda s: (s, 0, 0)),          # node mask
            pl.BlockSpec((g, N, pdims[0]), lambda s: (s, 0, 0)),   # padded features
        ] + layer_specs + [
            pl.BlockSpec((ph_last, out_pad), lambda s: (0, 0),
                         pipeline_mode=const_mode),                # final FC W^T
            pl.BlockSpec((1, out_pad), lambda s: (0, 0),
                         pipeline_mode=const_mode),                # final FC bias
        ],
        out_specs=pl.BlockSpec((1, g, out_pad), lambda s: (s, 0, 0)),
        compiler_params=pltpu.CompilerParams(
            dimension_semantics=("parallel",),
            vmem_limit_bytes=_vmem_limit_bytes(g, N, pdims, out_pad, n_layers)),
    )(adj_b, mask3, x_b, *layer_args, wfc, bfc)

    return out.reshape(b_pad, out_pad)[:B, :out_dim]


# ---------------------------------- main ---------------------------------------
if __name__ == "__main__":
    # F_in pads to 256 > hidden pad 128, so layer 0 exercises the
    # project-then-aggregate path and layer 1 the aggregate-then-project path.
    B, N, F_in = 2, 16, 160
    hidden = [64, 32]
    out_dim = 4

    key = jax.random.PRNGKey(0)
    ks = jax.random.split(key, 8)

    # synthetic inputs: features, symmetric 0/1 adjacency (no self loops), node mask
    x = jax.random.normal(ks[0], (B, N, F_in), jnp.float32)
    adj_rand = jax.random.uniform(ks[1], (B, N, N)) < 0.3
    adj = jnp.logical_or(adj_rand, jnp.transpose(adj_rand, (0, 2, 1)))
    adj = adj.astype(jnp.float32) * (1.0 - jnp.eye(N, dtype=jnp.float32))
    mask = (jax.random.uniform(ks[2], (B, N)) < 0.9).astype(jnp.float32)

    # deterministic parameter init (PyTorch Linear-style uniform(+-1/sqrt(fan_in)))
    def linear_init(k, fan_out, fan_in):
        kw, kb = jax.random.split(k)
        bound = 1.0 / jnp.sqrt(jnp.float32(fan_in))
        w = jax.random.uniform(kw, (fan_out, fan_in), jnp.float32, -bound, bound)
        b = jax.random.uniform(kb, (fan_out,), jnp.float32, -bound, bound)
        return w, b

    dims = [F_in] + hidden
    sage_params = [linear_init(ks[3 + i], dims[i + 1], dims[i])
                   for i in range(len(hidden))]
    fc_params = linear_init(ks[3 + len(hidden)], out_dim, hidden[-1])

    y = graphsage_forward(x, adj, mask, sage_params, fc_params)
    jax.block_until_ready(y)
    assert y.shape == (B, out_dim), y.shape

    # pure-JAX reference (f32) for a loose correctness check (bf16 matmuls in kernel)
    def reference(x, adj, mask, sage_params, fc_params):
        a = (adj != 0).astype(jnp.float32)
        deg = jnp.sum(a, axis=-1, keepdims=True)
        inv = 1.0 / (deg + 1.0)
        m = mask[..., None]
        h = x
        for w, b in sage_params:
            agg = (jnp.einsum('bij,bjf->bif', a, h) + h) * inv
            h = jnp.maximum(jnp.einsum('bif,of->bio', agg, w) + b, 0.0) * m
        pooled = jnp.max(h, axis=1)
        w_fc, b_fc = fc_params
        return pooled @ w_fc.T + b_fc

    y_ref = reference(x, adj, mask, sage_params, fc_params)
    assert bool(jnp.all(jnp.isfinite(y)))
    assert jnp.allclose(y, y_ref, rtol=5e-2, atol=5e-2), (y, y_ref)
    print("KERNEL_OK")
</pallas_src>

<mosaic_0001>
module attributes {stable_mosaic.version = 11 : i64} {
  func.func @kernel(%arg0: i32, %arg1: memref<1x16x16xbf16, #tpu.memory_space<vmem>>, %arg2: memref<1x16x1xf32, #tpu.memory_space<vmem>>, %arg3: memref<1x16x256xbf16, #tpu.memory_space<vmem>>, %arg4: memref<256x128xbf16, #tpu.memory_space<vmem>>, %arg5: memref<1x128xf32, #tpu.memory_space<vmem>>, %arg6: memref<128x128xbf16, #tpu.memory_space<vmem>>, %arg7: memref<1x128xf32, #tpu.memory_space<vmem>>, %arg8: memref<128x128xbf16, #tpu.memory_space<vmem>>, %arg9: memref<1x128xf32, #tpu.memory_space<vmem>>, %arg10: memref<1x1x128xf32, #tpu.memory_space<vmem>>) attributes {dimension_semantics = [#tpu.dimension_semantics<parallel>], iteration_bounds = array<i64: 2>, scalar_prefetch = 0 : i64, scratch_operands = 0 : i64, tpu.core_type = #tpu.core_type<tc>, window_params = [{transform_indices = @transform_0, window_bounds = array<i64: 1, 16, 16>}, {transform_indices = @transform_1, window_bounds = array<i64: 1, 16, 1>}, {transform_indices = @transform_2, window_bounds = array<i64: 1, 16, 256>}, {pipeline_mode = #tpu.pipeline_mode<synchronous>, transform_indices = @transform_3, window_bounds = array<i64: 256, 128>}, {pipeline_mode = #tpu.pipeline_mode<synchronous>, transform_indices = @transform_4, window_bounds = array<i64: 1, 128>}, {pipeline_mode = #tpu.pipeline_mode<synchronous>, transform_indices = @transform_5, window_bounds = array<i64: 128, 128>}, {pipeline_mode = #tpu.pipeline_mode<synchronous>, transform_indices = @transform_6, window_bounds = array<i64: 1, 128>}, {pipeline_mode = #tpu.pipeline_mode<synchronous>, transform_indices = @transform_7, window_bounds = array<i64: 128, 128>}, {pipeline_mode = #tpu.pipeline_mode<synchronous>, transform_indices = @transform_8, window_bounds = array<i64: 1, 128>}, {transform_indices = @transform_9, window_bounds = array<i64: 1, 1, 128>}]} {
    %c0 = arith.constant 0 : index
    %c0_0 = arith.constant 0 : index
    %c0_1 = arith.constant 0 : index
    %0 = vector.load %arg1[%c0, %c0_0, %c0_1] : memref<1x16x16xbf16, #tpu.memory_space<vmem>>, vector<1x16x16xbf16>
    %1 = arith.extf %0 : vector<1x16x16xbf16> to vector<1x16x16xf32>
    %cst = arith.constant dense<0.000000e+00> : vector<1x16xf32>
    %2 = vector.multi_reduction <add>, %1, %cst [2] : vector<1x16x16xf32> to vector<1x16xf32>
    %3 = vector.shape_cast %2 : vector<1x16xf32> to vector<1x16x1xf32>
    %cst_2 = arith.constant 1.000000e+00 : f32
    %4 = vector.broadcast %cst_2 : f32 to vector<1x16x1xf32>
    %5 = arith.addf %3, %4 : vector<1x16x1xf32>
    %cst_3 = arith.constant 1.000000e+00 : f32
    %6 = vector.broadcast %cst_3 : f32 to vector<1x16x1xf32>
    %7 = arith.divf %6, %5 : vector<1x16x1xf32>
    %c0_4 = arith.constant 0 : index
    %c0_5 = arith.constant 0 : index
    %c0_6 = arith.constant 0 : index
    %8 = vector.load %arg2[%c0_4, %c0_5, %c0_6] : memref<1x16x1xf32, #tpu.memory_space<vmem>>, vector<1x16x1xf32>
    %c0_7 = arith.constant 0 : index
    %c0_8 = arith.constant 0 : index
    %c0_9 = arith.constant 0 : index
    %9 = vector.load %arg3[%c0_7, %c0_8, %c0_9] : memref<1x16x256xbf16, #tpu.memory_space<vmem>>, vector<1x16x256xbf16>
    %10 = arith.extf %9 : vector<1x16x256xbf16> to vector<1x16x256xf32>
    %c0_10 = arith.constant 0 : index
    %c0_11 = arith.constant 0 : index
    %11 = vector.load %arg4[%c0_10, %c0_11] : memref<256x128xbf16, #tpu.memory_space<vmem>>, vector<256x128xbf16>
    %c0_12 = arith.constant 0 : index
    %c0_13 = arith.constant 0 : index
    %12 = vector.load %arg5[%c0_12, %c0_13] : memref<1x128xf32, #tpu.memory_space<vmem>>, vector<1x128xf32>
    %13 = vector.shape_cast %12 : vector<1x128xf32> to vector<1x1x128xf32>
    %14 = vector.shape_cast %10 : vector<1x16x256xf32> to vector<16x256xf32>
    %15 = arith.truncf %14 : vector<16x256xf32> to vector<16x256xbf16>
    %cst_14 = arith.constant dense<0.000000e+00> : vector<16x128xf32>
    %16 = tpu.matmul %15, %11, %cst_14 {dimension_numbers = #tpu.dot_dimension_numbers<[1], [0], [0], [1], [0, 0, 1, 1], [], []>} : vector<16x256xbf16>, vector<256x128xbf16>, vector<16x128xf32> -> vector<16x128xf32>
    %17 = vector.shape_cast %16 : vector<16x128xf32> to vector<1x16x128xf32>
    %18 = arith.truncf %17 : vector<1x16x128xf32> to vector<1x16x128xbf16>
    "tpu.trace_start"() <{level = 10 : i32, message = "gij,gjf->gif"}> : () -> ()
    %cst_15 = arith.constant dense<0.000000e+00> : vector<1x16x128xf32>
    %19 = tpu.matmul %0, %18, %cst_15 {dimension_numbers = #tpu.dot_dimension_numbers<[2], [1], [1], [2], [0, 0, 0, 1, 1, 2], [0], [0]>} : vector<1x16x16xbf16>, vector<1x16x128xbf16>, vector<1x16x128xf32> -> vector<1x16x128xf32>
    "tpu.trace_stop"() : () -> ()
    %20 = arith.addf %19, %17 : vector<1x16x128xf32>
    %21 = vector.broadcast %7 : vector<1x16x1xf32> to vector<1x16x128xf32>
    %22 = arith.mulf %20, %21 : vector<1x16x128xf32>
    %23 = vector.broadcast %13 : vector<1x1x128xf32> to vector<1x16x128xf32>
    %24 = arith.addf %22, %23 : vector<1x16x128xf32>
    %cst_16 = arith.constant 0.000000e+00 : f32
    %25 = vector.broadcast %cst_16 : f32 to vector<1x16x128xf32>
    %26 = arith.maximumf %24, %25 : vector<1x16x128xf32>
    %27 = vector.broadcast %8 : vector<1x16x1xf32> to vector<1x16x128xf32>
    %28 = arith.mulf %26, %27 : vector<1x16x128xf32>
    %c0_17 = arith.constant 0 : index
    %c0_18 = arith.constant 0 : index
    %29 = vector.load %arg6[%c0_17, %c0_18] : memref<128x128xbf16, #tpu.memory_space<vmem>>, vector<128x128xbf16>
    %c0_19 = arith.constant 0 : index
    %c0_20 = arith.constant 0 : index
    %30 = vector.load %arg7[%c0_19, %c0_20] : memref<1x128xf32, #tpu.memory_space<vmem>>, vector<1x128xf32>
    %31 = vector.shape_cast %30 : vector<1x128xf32> to vector<1x1x128xf32>
    %32 = arith.truncf %28 : vector<1x16x128xf32> to vector<1x16x128xbf16>
    "tpu.trace_start"() <{level = 10 : i32, message = "gij,gjf->gif"}> : () -> ()
    %cst_21 = arith.constant dense<0.000000e+00> : vector<1x16x128xf32>
    %33 = tpu.matmul %0, %32, %cst_21 {dimension_numbers = #tpu.dot_dimension_numbers<[2], [1], [1], [2], [0, 0, 0, 1, 1, 2], [0], [0]>} : vector<1x16x16xbf16>, vector<1x16x128xbf16>, vector<1x16x128xf32> -> vector<1x16x128xf32>
    "tpu.trace_stop"() : () -> ()
    %34 = arith.addf %33, %28 : vector<1x16x128xf32>
    %35 = vector.broadcast %7 : vector<1x16x1xf32> to vector<1x16x128xf32>
    %36 = arith.mulf %34, %35 : vector<1x16x128xf32>
    %37 = vector.shape_cast %36 : vector<1x16x128xf32> to vector<16x128xf32>
    %38 = arith.truncf %37 : vector<16x128xf32> to vector<16x128xbf16>
    %cst_22 = arith.constant dense<0.000000e+00> : vector<16x128xf32>
    %39 = tpu.matmul %38, %29, %cst_22 {dimension_numbers = #tpu.dot_dimension_numbers<[1], [0], [0], [1], [0, 0, 1, 1], [], []>} : vector<16x128xbf16>, vector<128x128xbf16>, vector<16x128xf32> -> vector<16x128xf32>
    %40 = vector.shape_cast %39 : vector<16x128xf32> to vector<1x16x128xf32>
    %41 = vector.broadcast %31 : vector<1x1x128xf32> to vector<1x16x128xf32>
    %42 = arith.addf %40, %41 : vector<1x16x128xf32>
    %cst_23 = arith.constant 0.000000e+00 : f32
    %43 = vector.broadcast %cst_23 : f32 to vector<1x16x128xf32>
    %44 = arith.maximumf %42, %43 : vector<1x16x128xf32>
    %45 = vector.broadcast %8 : vector<1x16x1xf32> to vector<1x16x128xf32>
    %46 = arith.mulf %44, %45 : vector<1x16x128xf32>
    %cst_24 = arith.constant dense<0xFF800000> : vector<1x128xf32>
    %47 = vector.multi_reduction <maximumf>, %46, %cst_24 [1] : vector<1x16x128xf32> to vector<1x128xf32>
    %48 = arith.truncf %47 : vector<1x128xf32> to vector<1x128xbf16>
    %c0_25 = arith.constant 0 : index
    %c0_26 = arith.constant 0 : index
    %49 = vector.load %arg8[%c0_25, %c0_26] : memref<128x128xbf16, #tpu.memory_space<vmem>>, vector<128x128xbf16>
    %cst_27 = arith.constant dense<0.000000e+00> : vector<1x128xf32>
    %50 = tpu.matmul %48, %49, %cst_27 {dimension_numbers = #tpu.dot_dimension_numbers<[1], [0], [0], [1], [0, 0, 1, 1], [], []>} : vector<1x128xbf16>, vector<128x128xbf16>, vector<1x128xf32> -> vector<1x128xf32>
    %c0_28 = arith.constant 0 : index
    %c0_29 = arith.constant 0 : index
    %51 = vector.load %arg9[%c0_28, %c0_29] : memref<1x128xf32, #tpu.memory_space<vmem>>, vector<1x128xf32>
    %52 = arith.addf %50, %51 : vector<1x128xf32>
    %c0_30 = arith.constant 0 : index
    %c0_31 = arith.constant 0 : index
    %c0_32 = arith.constant 0 : index
    %53 = vector.load %arg10[%c0_30, %c0_31, %c0_32] : memref<1x1x128xf32, #tpu.memory_space<vmem>>, vector<1x1x128xf32>
    %54 = vector.shape_cast %53 : vector<1x1x128xf32> to vector<1x128xf32>
    %55 = vector.shape_cast %52 : vector<1x128xf32> to vector<1x1x128xf32>
    tpu.vector_store %arg10[%c0_30, %c0_31, %c0_32], %55 {strides = array<i32>} : memref<1x1x128xf32, #tpu.memory_space<vmem>>, vector<1x1x128xf32>,
    return
  }
  func.func @transform_0(%arg0: i32) -> (i32, i32, i32) {
    %c0_i32 = arith.constant 0 : i32
    %c0_i32_0 = arith.constant 0 : i32
    %c0_i32_1 = arith.constant 0 : i32
    return %arg0, %c0_i32, %c0_i32_0 : i32, i32, i32
  }
  func.func @transform_1(%arg0: i32) -> (i32, i32, i32) {
    %c0_i32 = arith.constant 0 : i32
    %c0_i32_0 = arith.constant 0 : i32
    %c0_i32_1 = arith.constant 0 : i32
    return %arg0, %c0_i32, %c0_i32_0 : i32, i32, i32
  }
  func.func @transform_2(%arg0: i32) -> (i32, i32, i32) {
    %c0_i32 = arith.constant 0 : i32
    %c0_i32_0 = arith.constant 0 : i32
    %c0_i32_1 = arith.constant 0 : i32
    return %arg0, %c0_i32, %c0_i32_0 : i32, i32, i32
  }
  func.func @transform_3(%arg0: i32) -> (i32, i32) {
    %c0_i32 = arith.constant 0 : i32
    %c0_i32_0 = arith.constant 0 : i32
    %c0_i32_1 = arith.constant 0 : i32
    return %c0_i32, %c0_i32_0 : i32, i32
  }
  func.func @transform_4(%arg0: i32) -> (i32, i32) {
    %c0_i32 = arith.constant 0 : i32
    %c0_i32_0 = arith.constant 0 : i32
    %c0_i32_1 = arith.constant 0 : i32
    return %c0_i32, %c0_i32_0 : i32, i32
  }
  func.func @transform_5(%arg0: i32) -> (i32, i32) {
    %c0_i32 = arith.constant 0 : i32
    %c0_i32_0 = arith.constant 0 : i32
    %c0_i32_1 = arith.constant 0 : i32
    return %c0_i32, %c0_i32_0 : i32, i32
  }
  func.func @transform_6(%arg0: i32) -> (i32, i32) {
    %c0_i32 = arith.constant 0 : i32
    %c0_i32_0 = arith.constant 0 : i32
    %c0_i32_1 = arith.constant 0 : i32
    return %c0_i32, %c0_i32_0 : i32, i32
  }
  func.func @transform_7(%arg0: i32) -> (i32, i32) {
    %c0_i32 = arith.constant 0 : i32
    %c0_i32_0 = arith.constant 0 : i32
    %c0_i32_1 = arith.constant 0 : i32
    return %c0_i32, %c0_i32_0 : i32, i32
  }
  func.func @transform_8(%arg0: i32) -> (i32, i32) {
    %c0_i32 = arith.constant 0 : i32
    %c0_i32_0 = arith.constant 0 : i32
    %c0_i32_1 = arith.constant 0 : i32
    return %c0_i32, %c0_i32_0 : i32, i32
  }
  func.func @transform_9(%arg0: i32) -> (i32, i32, i32) {
    %c0_i32 = arith.constant 0 : i32
    %c0_i32_0 = arith.constant 0 : i32
    %c0_i32_1 = arith.constant 0 : i32
    return %arg0, %c0_i32, %c0_i32_0 : i32, i32, i32
  }
}

</mosaic_0001>

<bundles_post_ra>
// kernel: tpu_custom_call.1
= control target key start
LH: loop header
LB: loop body
LE: loop exit
PB: predicated region body
PF: predicated region fallthrough
CT: control target
= control target key end

     0   :  { %s1783_s0 = inlined_call_operand.hbm [shape: bf16[2,16,16], index: 0, kind: input, shape index: {}]   ;;  %s1784_s1 = inlined_call_operand.vmem [shape: f32[2,16,1], index: 1, kind: input, shape index: {}]   ;;  %s1785_s2 = inlined_call_operand.vmem [shape: bf16[2,16,256], index: 2, kind: input, shape index: {}]   ;;  %s1786_s3 = inlined_call_operand.hbm [shape: bf16[256,128], index: 3, kind: input, shape index: {}]   ;;  %s1787_s4 = inlined_call_operand.vmem [shape: f32[1,128], index: 4, kind: input, shape index: {}]   ;;  %s1788_s5 = inlined_call_operand.hbm [shape: bf16[128,128], index: 5, kind: input, shape index: {}]   ;;  %s1789_s6 = inlined_call_operand.vmem [shape: f32[1,128], index: 6, kind: input, shape index: {}]   ;;  %s1790_s7 = inlined_call_operand.hbm [shape: bf16[128,128], index: 7, kind: input, shape index: {}]   ;;  %s1791_s8 = inlined_call_operand.vmem [shape: f32[1,128], index: 8, kind: input, shape index: {}]   ;;  %s1792_s9 = inlined_call_operand.hbm [shape: f32[2,1,128], index: 9, kind: output, shape index: {}]  }
   0x1   :  { %1795 = sst [smem:[#allocation15_spill]] %s1786_s3 }
   0x2   :  { %1796 = sst [smem:[#allocation16_spill]] %s1788_s5 }
   0x3   :  { %1797 = sst [smem:[#allocation17_spill]] %s1790_s7 }
   0x4   :  { %14 = vsyncpa [#allocation3], 0 }
   0x5   :  { %16 = vsyncpa [#allocation3 + $0x1], 0 }
   0x6   :  { %17 = vsyncpa [#allocation6], 0 }
   0x7   :  { %18 = vsyncpa [#allocation9], 0 }
   0x8   :  { %19 = vsyncpa [#allocation4], 0 }
   0x9   :  { %21 = vsyncpa [#allocation4 + $0x1], 0  ;;  %s1576_s30 = smov 0   ;;  %s1578_s10 = smov 0  }
   0xa   :  { %s1580_s11 = smov 0   ;;  %s1582_s12 = smov 0  }
   0xb LB: > { %s1597_s13 = sadd.s32 4294967295, %s1518_s12   ;;  %s1036_s14 = sadd.s32 4294967294, %s1518_s12   ;;  %s1518_s12 = sphi %s1582_s12, %s1813_s12   ;;  %s1514_s11 = sphi %s1580_s11, %s1812_s11   ;;  %s1510_s10 = sphi %s1578_s10, %s1811_s10   ;;  %s1506_s30 = sphi %s1576_s30, %s1810_s30  }
   0xc   : > { %p47_p0 = scmp.ne.s32.totalorder %s1510_s10, %s1506_s30  ;;  %p48_p1 = scmp.eq.s32.totalorder %s1597_s13, 0 }
   0xd   : > { %p249_p2 = scmp.eq.s32.totalorder %s1597_s13, 1  ;;  %p255_p3 = scmp.eq.s32.totalorder %s1036_s14, 1 }
   0xe   : > { %p1606_p4 = por %p48_p1, %p47_p0  ;;  %p1037_p5 = scmp.ge.s32.totalorder %s1518_s12, 1 }
   0xf   : > { %p1611_p6 = por %p255_p3, %p47_p0  ;;  %p262_p7 = scmp.lt.s32.totalorder %s1518_s12, 3 }
  0x10   : > { %s1800_s3 = sld [smem:[#allocation15_spill]]  ;;  %s1520_s21 = smov [#allocation5]  }
  0x11   : > { %p1619_p8 = pnand %p1037_p5, %p262_p7  ;;  %s275_s22 = sshll.u32 %s1520_s21, 4  ;;  %s276_s22 = int_to_ptr.vmem [resolvable:$true] %s275_s22 }
  0x12   : > { %s1803_s5 = sld [smem:[#allocation16_spill]]  ;;  %s1793_s27 = smov 64  }
  0x13   : > { %p1252_p9 = pneg %p1619_p8  ;;  %s1794_s28 = smov 4  }
  0x14   : > { %s1523_s29 = smov [#allocation7]   ;;  %s1804_s7 = sld [smem:[#allocation17_spill]] }
  0x15   : > { %p1627_p10 = pnand %p1252_p9, %p48_p1  ;;  %s292_s14 = sshll.u32 %s1523_s29, 4  ;;  %s293_s14 = int_to_ptr.vmem [resolvable:$true] %s292_s14 }
  0x16   : > { %s273_s19 = sshll.u32 %s1800_s3, 4  ;;  %s1649_s24 = sadd.s32 1, %s1518_s12   ;;  %s274_s19 = int_to_ptr.hbm [resolvable:$true] %s273_s19 }
  0x17   : > { %1255 = dma.hbm_to_vmem [thread:$0]  (!%p1627_p10), %s274_s19, 2048, %s276_s22, [#allocation6], %s1793_s27, %s1793_s27, %s1794_s28  }
  0x18   : > { %s290_s26 = sshll.u32 %s1803_s5, 4  ;;  %s1524_s19 = smov [#allocation8]   ;;  %s291_s26 = int_to_ptr.hbm [resolvable:$true] %s290_s26 }
  0x19   : > { %1258 = dma.hbm_to_vmem [thread:$0]  (!%p1627_p10), %s291_s26, 1024, %s293_s14, [#allocation6], %s1793_s27, %s1793_s27, %s1794_s28  }
  0x1a   : > { %s307_s21 = sshll.u32 %s1804_s7, 4  ;;  %s309_s22 = sshll.u32 %s1524_s19, 4  ;;  %s308_s21 = int_to_ptr.hbm [resolvable:$true] %s307_s21  ;;  %s310_s22 = int_to_ptr.vmem [resolvable:$true] %s309_s22 }
  0x1b   : > { %1261 = dma.hbm_to_vmem [thread:$0]  (!%p1627_p10), %s308_s21, 1024, %s310_s22, [#allocation9], %s1793_s27, %s1793_s27, %s1794_s28  }
  0x1c   : > { %s31_s25 = ssub.s32 %s1518_s12, %s1649_s24  ;;  %s34_s29 = sadd.s32 1, %s1514_s11 }
  0x1d   : > { %p32_p12 = scmp.eq.s32.totalorder %s31_s25, 0  ;;  %p41_p13 = scmp.ne.s32.totalorder %s1514_s11, %s1510_s10 }
  0x1e   : > { %p42_p0 = scmp.eq.s32.totalorder %s1518_s12, 0  ;;  %p1273_p5 = scmp.lt.s32.totalorder %s1518_s12, 2 }
  0x1f   : > { %s1663_s17 = scalar_select %p32_p12, %s1514_s11, %s34_s29  }
  0x20   : > { %p1667_p3 = por %p249_p2, %p41_p13  ;;  %s326_s14 = sand.u32 1, %s1514_s11  }
  0x21   : > { %s1198_s23 = sshll.u32 %s1518_s12, 3  ;;  %p43_p7 = por %p42_p0, %p41_p13 }
  0x22   : > { %s1042_s18 = sshll.u32 %s326_s14, 3  ;;  %s335_s21 = scalar_lea.hbm %s1783_s0, %s1198_s23 }
  0x23   : > { %s336_s22 = sshll.u32 %s335_s21, 4  ;;  %s330_s25 = scalar_lea.vmem [#allocation2], %s1042_s18  ;;  %s337_s22 = int_to_ptr.hbm [resolvable:$true] %s336_s22 }
  0x24   : > { %s338_s27 = sshll.u32 %s330_s25, 4  ;;  %p1677_p9 = pnand %p1273_p5, %p43_p7  ;;  %s339_s27 = int_to_ptr.vmem [resolvable:$true] %s338_s27 }
  0x25   : > { %s327_s28 = scalar_lea.sflag [#allocation3], %s326_s14  ;;  %s1414_s5 = sshra.s32 %s337_s22, 4  ;;  %s1415_s5 = int_to_ptr.hbm [resolvable:$true] %s1414_s5 }
  0x26   : > { %s1416_s7 = scalar_lea.hbm %s1415_s5, 8  ;;  %p1418_p10 = pneg %p1677_p9 }
  0x27   : > { %p1417_p2 = scmp.ne.s32.totalorder %s1415_s5, %s1416_s7  ;;  %s1421_s18 = scalar_lea.hbm %s1783_s0, 16 }
  0x28   : > { %p1422_p0 = scmp.lt.s32.totalorder %s1415_s5, %s1783_s0  ;;  %p1423_p5 = scmp.lt.s32.totalorder %s1421_s18, %s1416_s7 }
  0x29   : > { %p1419_p12 = pnand %p1418_p10, %p1417_p2 }
  0x2a   : > { %p1424_p7 = por %p1423_p5, %p1422_p0 }
  0x2b   : > { %p1420_p13 = pneg %p1419_p12 }
  0x2d   : > { %p1425_p11 = pnand %p1424_p7, %p1420_p13 }
  0x2f   : > { %1428 = shalt.err (!%p1425_p11)
}
  0x30   : > { %s1807_s14 = smov 4   ;;  %s1808_s25 = smov 64  }
  0x31   : > { %1265 = dma.hbm_to_vmem [thread:$0]  (!%p1677_p9), %s337_s22, 128, %s339_s27, %s327_s28, %s1808_s25, %s1808_s25, %s1807_s14  }
  0x32   : > { %366 = sbr.rel (%p1619_p8) target bundleno = 845 (0x34d), region = 56  ;;  %s1697_s3 = sand.u32 (!%p1619_p8), 1, %s1510_s10  }
  0x33   : > { %s1046_s5 = sshll.u32 (!%p1619_p8), %s1697_s3, 3  ;;  %s369_s7 = scalar_lea.sflag (!%p1619_p8), [#allocation3], %s1697_s3 }
  0x34   : > { %s1701_s23 = scalar_lea.vmem (!%p1619_p8), [#allocation2], %s1046_s5 }
  0x37   : > { %1489 = dma.done.wait (%p1606_p4), %s369_s7, 128  }
  0x38   : > { %1491 = vsyncadd (%p1606_p4), %s369_s7, 4294967168 }
  0x39   : > { %1493 = dma.done.wait (%p48_p1), [#allocation6], 3072  }
  0x3a   : > { %1495 = vsyncadd (%p48_p1), [#allocation6], 4294964224 }
  0x3b   : > { %1497 = dma.done.wait (%p48_p1), [#allocation9], 1024  }
  0x3c   : > { %1499 = vsyncadd (%p48_p1), [#allocation9], 4294966272  ;;  %v1211_v0 = vld [vmem:[#allocation5 + $0x38] sm:$0xff]  ;;  %v1210_v2 = vld [vmem:[#allocation5 + $0x30] sm:$0xff]  ;;  %p432_p4 = scmp.lt.s32.totalorder %s1597_s13, 1  ;;  %vm447_vm0 = vcmask 130048  }
  0x3d   : > { %v1219_v1 = vld [vmem:[#allocation5 + $0x78] sm:$0xff]  ;;  %625 = vmatpush.bf16.msra.mxu0 %v1211_v0  ;;  %v1218_v3 = vld [vmem:[#allocation5 + $0x70] sm:$0xff]  ;;  %v1209_v4 = vld [vmem:[#allocation5 + $0x28] sm:$0xff]  ;;  %v1525_v28 = vmov 0   ;;  %s431_s28 = scalar_lea.vmem [#allocation10], %s1697_s3  ;;  %s905_s18 = scalar_lea.sflag [#allocation4], %s1697_s3 }
  0x3e   : > { %639 = vmatpush.bf16.msra.mxu1 %v1219_v1  ;;  %v1217_v5 = vld [vmem:[#allocation5 + $0x68] sm:$0xff]  ;;  %v1208_v6 = vld [vmem:[#allocation5 + $0x20] sm:$0xff]  ;;  %v1207_v8 = vld [vmem:[#allocation5 + $0x18] sm:$0xff]  ;;  %s1717_s15 = scalar_select %p432_p4, %s1597_s13, 1  ;;  %1316 = vset.pattern.permute.xlu1 %v1525_v28 }
  0x3f   : > { %v1216_v7 = vld [vmem:[#allocation5 + $0x60] sm:$0xff]  ;;  %v1215_v9 = vld [vmem:[#allocation5 + $0x58] sm:$0xff]  ;;  %v1206_v10 = vld [vmem:[#allocation5 + $0x10] sm:$0xff]  ;;  %1317 = vset.pattern.permute.xlu0 %v1525_v28  ;;  %s1464_s25 = scalar_lea.hbm %s1792_s9, 2 }
  0x40   : > { %v1214_v11 = vld [vmem:[#allocation5 + $0x50] sm:$0xff]  ;;  %s1199_s20 = sshll.u32 %s1717_s15, 4  ;;  %v1205_v12 = vld [vmem:[#allocation5 + $0x8] sm:$0xff]  ;;  %v1204_v14 = vld [vmem:[#allocation5] sm:$0xff]  ;;  %s913_s15 = scalar_lea.hbm %s1792_s9, %s1597_s13 }
  0x41   : > { %626 = vmatpush.bf16.msra.mxu0 %v1210_v2  ;;  %v1213_v13 = vld [vmem:[#allocation5 + $0x48] sm:$0xff]  ;;  %s441_s22 = scalar_lea.vmem %s1785_s2, %s1199_s20  ;;  %v1212_v15 = vld [vmem:[#allocation5 + $0x40] sm:$0xff]  ;;  %v443_v22 = vld [vmem:[%s1701_s23] sm:$0xff]   ;;  %s436_s19 = scalar_lea.vmem %s1784_s1, %s1199_s20 }
  0x42   : > { %640 = vmatpush.bf16.msra.mxu1 %v1218_v3  ;;  %v1056_v16 = vld [vmem:[%s441_s22] sm:$0xf]  ;;  %v1203_v17 = vld [vmem:[%s441_s22 + $0x4] sm:$0xf0]  ;;  %v1202_v18 = vld [vmem:[%s441_s22 + $0x4] sm:$0xf]  ;;  %v445_v23 = vunpack.c.l.bf16 %v443_v22  ;;  %v446_v25 = vunpack.c.h.bf16 %v443_v22 }
  0x43   : > { %v1058_v19 = vld [vmem:[%s441_s22 + $0x8] sm:$0xf0]  ;;  %v1057_v20 = vor.u32 %v1203_v17, %v1056_v16  ;;  %v486_v27 = vld [vmem:[%s436_s19] sm:$0xff]  ;;  %v1225_v2 = vld [vmem:[#allocation7 + $0x28] sm:$0xff]  ;;  %s915_s22 = sshll.u32 %s431_s28, 4  ;;  %s917_s29 = sshll.u32 %s913_s15, 4  ;;  %s916_s22 = int_to_ptr.vmem [resolvable:$true] %s915_s22  ;;  %s918_s29 = int_to_ptr.hbm [resolvable:$true] %s917_s29 }
  0x44   : > { %v1061_v21 = vor.u32 %v1202_v18, %v1058_v19  ;;  %v448_v24 = vsel %vm447_vm0, %v445_v23, 0.0  ;;  %v451_v26 = vsel %vm447_vm0, %v446_v25, 0.0  ;;  %694 = vperm.xlu1 %1316, %v486_v27   ;;  %v487_v29 = vld [vmem:[%s436_s19 + $0x8] sm:$0xff]  ;;  %v1226_v58 = vld [vmem:[#allocation7 + $0x30] sm:$0xff]  ;;  %v1221_v28 = vld [vmem:[#allocation7 + $0x8] sm:$0xff]  ;;  %s1458_s19 = sshra.s32 %s918_s29, 4  ;;  %s1459_s19 = int_to_ptr.hbm [resolvable:$true] %s1458_s19 }
  0x45   : > { %627 = vmatpush.bf16.msra.mxu0 %v1209_v4  ;;  %449 = vadd.xlane.f32.xlu0 %v448_v24  ;;  %v1730_v41 = vld [vmem:[%s1701_s23] sm:$0xff]  ;;  %s1460_s21 = scalar_lea.hbm %s1459_s19, 1  ;;  %p1465_p9 = scmp.lt.s32.totalorder %s1459_s19, %s1792_s9 }
  0x46   : > { %641 = vmatpush.bf16.msra.mxu1 %v1217_v5  ;;  %v1227_v56 = vld [vmem:[#allocation7 + $0x38] sm:$0xff]  ;;  %v1318_v63 = vld [vmem:[%s1787_s4] ss:$0 sm:$0xff]  ;;  %p1461_p1 = scmp.ne.s32.totalorder %s1459_s19, %s1460_s21  ;;  %p1466_p2 = scmp.lt.s32.totalorder %s1464_s25, %s1460_s21 }
  0x47   : > { %v1222_v27 = vld [vmem:[#allocation7 + $0x10] sm:$0xff] }
  0x48   : > { %p1462_p8 = pnand %p1461_p1, %p1667_p3  ;;  %p1467_p10 = por %p1466_p2, %p1465_p9 }
  0x49   : > { %628 = vmatpush.bf16.msra.mxu0 %v1208_v6 }
  0x4a   : > { %642 = vmatpush.bf16.msra.mxu1 %v1216_v7  ;;  %p1463_p11 = pneg %p1462_p8 }
  0x4c   : > { %699 = vperm.xlu1 %1316, %v487_v29   ;;  %v1220_v29 = vld [vmem:[#allocation7] sm:$0xff]  ;;  %p1468_p12 = pnand %p1467_p10, %p1463_p11 }
  0x4d   : > { %629 = vmatpush.bf16.msra.mxu0 %v1207_v8  ;;  %452 = vadd.xlane.f32.xlu0 %v451_v26  ;;  %v1223_v26 = vld [vmem:[#allocation7 + $0x18] sm:$0xff] }
  0x4e   : > { %643 = vmatpush.bf16.msra.mxu1 %v1215_v9  ;;  %v1224_v9 = vld [vmem:[#allocation7 + $0x20] sm:$0xff] }
  0x51   : > { %630 = vmatpush.bf16.msra.mxu0 %v1206_v10 }
  0x52   : > { %644 = vmatpush.bf16.msra.mxu1 %v1214_v11 }
  0x55   : > { %631 = vmatpush.bf16.msra.mxu0 %v1205_v12 }
  0x56   : > { %645 = vmatpush.bf16.msra.mxu1 %v1213_v13 }
  0x59   : > { %632 = vmatpush.bf16.msra.mxu0 %v1204_v14 }
  0x5a   : > { %646 = vmatpush.bf16.msra.mxu1 %v1212_v15 }
  0x5c   : > { %633 = vmatmul.bf16.vlgmr.msra.gmra.mxu0 %v1057_v20 }
  0x5d   : > { %647 = vmatmul.bf16.vlgmr.msra.gmra.mxu1 %v1061_v21 }
  0xb6   : > { %v1737_v7 = vpop.permute.xlu1 %694 }
  0xb8   : > { %v450_v42 = vpop.xlane.xlu0 %449 }
  0xb9   : > { %v454_v43 = vadd.f32 1.0, %v450_v42  ;;  %v1230_v42 = vld [vmem:[#allocation8 + $0x10] sm:$0xff] }
  0xbb   : > { %1320 = vrcp.f32 %v454_v43  ;;  %vm461_vm1 = vweird.f32 %v454_v43  ;;  %v467_v52 = vand.u32 2147483648, %v454_v43  ;;  %v465_v55 = vand.u32 2147483647, %v454_v43 }
  0xbd   : > { %v468_v57 = vor.u32 1.1754944e-38, %v467_v52  ;;  %vm466_vm4 = vcmp.eq.f32.partialorder %v465_v55, 8.507059e+37 }
  0xbe   : > { %v700_v19 = vpop.permute.xlu1 %699 }
  0xc0   : > { %v453_v44 = vpop.xlane.xlu0 %452 }
  0xc1   : > { %v455_v45 = vadd.f32 1.0, %v453_v44  ;;  %v1321_v46 = vpop.eup %1320  ;;  %v1228_v44 = vld [vmem:[#allocation8] sm:$0xff] }
  0xc2   : > { %v457_v47 = vmul.f32 %v1321_v46, %v454_v43  ;;  %vm462_vm2 = vweird.f32 %v1321_v46  ;;  %v1229_v43 = vld [vmem:[#allocation8 + $0x8] sm:$0xff] }
  0xc3   : > { %1322 = vrcp.f32 %v455_v45  ;;  %vm463_vm3 = vmor %vm461_vm1, %vm462_vm2  ;;  %vm476_vm5 = vweird.f32 %v455_v45  ;;  %v482_v1 = vand.u32 2147483648, %v455_v45  ;;  %v480_v5 = vand.u32 2147483647, %v455_v45 }
  0xc4   : > { %v458_v48 = vsub.f32 1.0, %v457_v47 }
  0xc5   : > { %v483_v8 = vor.u32 1.1754944e-38, %v482_v1  ;;  %vm481_vm8 = vcmp.eq.f32.partialorder %v480_v5, 8.507059e+37 }
  0xc6   : > { %v459_v51 = vmul.f32 %v1321_v46, %v458_v48 }
  0xc8   : > { %v460_v54 = vadd.f32 %v1321_v46, %v459_v51 }
  0xc9   : > { %v1323_v49 = vpop.eup %1322 }
  0xca   : > { %v472_v50 = vmul.f32 %v1323_v49, %v455_v45  ;;  %v464_v59 = vsel %vm463_vm3, %v1321_v46, %v460_v54  ;;  %vm477_vm6 = vweird.f32 %v1323_v49  ;;  %v1319_v46 = vld [vmem:[%s1789_s6] ss:$0 sm:$0xff] }
  0xcb   : > { %v469_v0 = vsel %vm466_vm4, %v468_v57, %v464_v59  ;;  %vm478_vm7 = vmor %vm476_vm5, %vm477_vm6 }
  0xcc   : > { %v473_v53 = vsub.f32 1.0, %v472_v50 }
  0xce   : > { %v474_v60 = vmul.f32 %v1323_v49, %v473_v53 }
  0xd0   : > { %v475_v4 = vadd.f32 %v1323_v49, %v474_v60 }
  0xd2   : > { %v479_v10 = vsel %vm478_vm7, %v1323_v49, %v475_v4 }
  0xd3   : > { %v484_v14 = vsel %vm481_vm8, %v483_v8, %v479_v10 }
  0xd9   : > { %v634_v30 = vpop.f32.mrf.mxu0 }
  0xda   : > { %v648_v31 = vpop.f32.mrf.mxu1 }
  0xdb   : > { %v649_v32 = vadd.f32 %v648_v31, %v634_v30 }
  0xdd   : > { %v653_v36 = vpack.c.bf16 %v649_v32, %v649_v32 }
  0xdf   : > { %v662_v38 = vunpack.c.l.b16 %v653_v36 }
  0xe1   : > { %v636_v33 = vpop.f32.mrf.mxu0 }
  0xe2   : > { %v650_v34 = vpop.f32.mrf.mxu1 }
  0xe3   : > { %v651_v35 = vadd.f32 %v650_v34, %v636_v33 }
  0xe5   : > { %v654_v37 = vpack.c.bf16 %v651_v35, %v651_v35 }
  0xe7   : > { %v663_v39 = vunpack.c.l.b16 %v654_v37  ;;  %v1235_v37 = vld [vmem:[#allocation8 + $0x38] sm:$0xff] }
  0xe9   : > { %v664_v40 = vpack.c.b16 %v663_v39, %v662_v38  ;;  %v1234_v38 = vld [vmem:[#allocation8 + $0x30] sm:$0xff]  ;;  %v1233_v39 = vld [vmem:[#allocation8 + $0x28] sm:$0xff] }
  0xeb   : > { %676 = vmatpush.bf16.msra.mxu2 %v664_v40  ;;  %v1232_v40 = vld [vmem:[#allocation8 + $0x20] sm:$0xff] }
  0xee   : > { %1130 = vmatmul.msk.bf16.vlgmr.msra.gmra.mxu2 %vm447_vm0, %v1730_v41 }
  0xef   : > { %794 = vmatpush.bf16.msrb.mxu2 %v1227_v56 }
  0xf3   : > { %795 = vmatpush.bf16.msrb.mxu2 %v1226_v58 }
  0xf7   : > { %796 = vmatpush.bf16.msrb.mxu2 %v1225_v2 }
  0xfb   : > { %797 = vmatpush.bf16.msrb.mxu2 %v1224_v9 }
  0xff   : > { %798 = vmatpush.bf16.msrb.mxu2 %v1223_v26 }
 0x103   : > { %799 = vmatpush.bf16.msrb.mxu2 %v1222_v27 }
 0x107   : > { %800 = vmatpush.bf16.msrb.mxu2 %v1221_v28 }
 0x10b   : > { %801 = vmatpush.bf16.msrb.mxu2 %v1220_v29 }
 0x171   : > { %v678_v61 = vpop.f32.mrf.mxu2 }
 0x172   : > { %v679_v62 = vadd.f32 %v678_v61, %v649_v32 }
 0x174   : > { %v683_v3 = vmul.f32 %v679_v62, %v469_v0  ;;  %v841_v62 = vld [vmem:[%s1791_s8] sm:$0x1] }
 0x176   : > { %v688_v6 = vadd.f32 %v1318_v63, %v683_v3 }
 0x178   : > { %v690_v12 = vmax.f32 %v688_v6, 0.0 }
 0x179   : > { %v680_v11 = vpop.f32.mrf.mxu2 }
 0x17a   : > { %v681_v13 = vadd.f32 %v680_v11, %v651_v35  ;;  %v702_v17 = vmul.f32 %v1737_v7, %v690_v12 }
 0x17c   : > { %v684_v15 = vmul.f32 %v681_v13, %v484_v14  ;;  %v721_v21 = vpack.c.bf16 %v702_v17, %v702_v17 }
 0x17e   : > { %v689_v16 = vadd.f32 %v1318_v63, %v684_v15  ;;  %v725_v23 = vunpack.c.l.b16 %v721_v21 }
 0x180   : > { %v691_v18 = vmax.f32 %v689_v16, 0.0 }
 0x182   : > { %v703_v20 = vmul.f32 %v700_v19, %v691_v18 }
 0x184   : > { %v722_v22 = vpack.c.bf16 %v703_v20, %v703_v20 }
 0x186   : > { %v726_v24 = vunpack.c.l.b16 %v722_v22 }
 0x188   : > { %v727_v25 = vpack.c.b16 %v726_v24, %v725_v23 }
 0x18a   : > { %736 = vmatpush.bf16.msra.mxu3 %v727_v25 }
 0x18d   : > { %1131 = vmatmul.msk.bf16.vlgmr.msra.gmra.mxu3 %vm447_vm0, %v1730_v41  ;;  %v1231_v41 = vld [vmem:[#allocation8 + $0x18] sm:$0xff] }
 0x18e   : > { %890 = vmatpush.bf16.msrb.mxu3 %v1235_v37 }
 0x192   : > { %891 = vmatpush.bf16.msrb.mxu3 %v1234_v38 }
 0x196   : > { %892 = vmatpush.bf16.msrb.mxu3 %v1233_v39 }
 0x19a   : > { %893 = vmatpush.bf16.msrb.mxu3 %v1232_v40 }
 0x19e   : > { %894 = vmatpush.bf16.msrb.mxu3 %v1231_v41 }
 0x1a2   : > { %895 = vmatpush.bf16.msrb.mxu3 %v1230_v42 }
 0x1a6   : > { %896 = vmatpush.bf16.msrb.mxu3 %v1229_v43 }
 0x1aa   : > { %897 = vmatpush.bf16.msrb.mxu3 %v1228_v44 }
 0x210   : > { %v738_v30 = vpop.f32.mrf.mxu3 }
 0x211   : > { %v739_v31 = vadd.f32 %v738_v30, %v702_v17 }
 0x213   : > { %v743_v34 = vmul.f32 %v739_v31, %v469_v0 }
 0x218   : > { %v740_v32 = vpop.f32.mrf.mxu3 }
 0x219   : > { %v741_v33 = vadd.f32 %v740_v32, %v703_v20 }
 0x21b   : > { %v744_v35 = vmul.f32 %v741_v33, %v484_v14 }
 0x21d   : > { %v745_v36 = vpack.c.bf16 %v744_v35, %v743_v34 }
 0x21f   : > { %802 = vmatmul.bf16.vlgmr.msrb.gmra.mxu2 %v745_v36 }
 0x2a2   : > { %v803_v45 = vpop.f32.mrf.mxu2 }
 0x2a3   : > { %v811_v47 = vadd.f32 %v1319_v46, %v803_v45 }
 0x2a5   : > { %v813_v49 = vmax.f32 %v811_v47, 0.0 }
 0x2a7   : > { %v815_v52 = vmul.f32 %v813_v49, %v1737_v7 }
 0x2aa   : > { %v805_v48 = vpop.f32.mrf.mxu2 }
 0x2ab   : > { %v812_v50 = vadd.f32 %v1319_v46, %v805_v48 }
 0x2ad   : > { %v814_v51 = vmax.f32 %v812_v50, 0.0 }
 0x2af   : > { %v816_v53 = vmul.f32 %v814_v51, %v700_v19 }
 0x2b1   : > { %v817_v54 = vmax.f32 %v815_v52, %v816_v53 }
 0x2b3   : > { %v818_v55 = vrot.slane %v817_v54, 4 }
 0x2b5   : > { %v819_v56 = vmax.f32 %v817_v54, %v818_v55 }
 0x2b7   : > { %v820_v57 = vrot.slane %v819_v56, 2 }
 0x2b9   : > { %v821_v58 = vmax.f32 %v819_v56, %v820_v57 }
 0x2bb   : > { %v822_v59 = vrot.slane %v821_v58, 1 }
 0x2bd   : > { %v823_v60 = vmax.f32 %v821_v58, %v822_v59 }
 0x2bf   : > { %v824_v61 = vpack.c.bf16 %v823_v60, %v823_v60 }
 0x2c1   : > { %898 = vmatmul.bf16.vlgmr.msrb.gmra.mxu3 %v824_v61 }
 0x344   : > { %v899_v63 = vpop.f32.mrf.mxu3 }
 0x345   : > { %v900_v0 = vadd.f32 %v899_v63, %v841_v62 }
 0x347   : > { %903 = vst [vmem:[%s431_s28] sm:$0x1] %v900_v0 }
 0x348   : > { %1471 = shalt.err (!%p1468_p12)
}
 0x349   : > { %1250 = dma.vmem_to_hbm [thread:$0]  (%p1667_p3), %s916_s22, 16, %s918_s29, %s905_s18  }
 0x34c   : > { %v901_v1 = vpop.f32.mrf.mxu3 }
 0x34d PF: > { %s929_s3 = sand.u32 1, %s1506_s30   ;;  %p1809_p13 = scmp.ge.s32.totalorder %s1518_s12, 2 }
 0x34e   : > { %s930_s23 = scalar_lea.sflag [#allocation4], %s929_s3 }
 0x34f   : > { %p1267_p0 = pnand %p1809_p13, %p1611_p6 }
 0x351   : > { %p1268_p5 = pneg %p1267_p0 }
 0x353   : > { %1501 = dma.done.wait (%p1268_p5), %s930_s23, 16  }
 0x354   : > { %1503 = vsyncadd (%p1268_p5), %s930_s23, 4294967280  ;;  %p24_p7 = scmp.ge.s32.totalorder %s1649_s24, 4   ;;  %s1810_s30 = smov %s1510_s10 }
 0x355   : > { %s1811_s10 = smov %s1514_s11  ;;  %s1812_s11 = smov %s1663_s17 }
 0x356   : > { %s1813_s12 = smov %s1649_s24  ;;  %26 = sbr.rel (!%p24_p7) target bundleno = 11 (0xb), region = 119 }
 0x35b   :  { %935 = vsyncpa [#allocation3], 1 }
 0x35c   :  { %937 = vsyncpa [#allocation3 + $0x1], 1 }
 0x35d   :  { %938 = vsyncpa [#allocation6], 1 }
 0x35e   :  { %939 = vsyncpa [#allocation9], 1 }
 0x35f   :  { %940 = vsyncpa [#allocation4], 1 }
 0x360   :  { %942 = vsyncpa [#allocation4 + $0x1], 1 }

</bundles_post_ra>
